<compile_context>
chip_gen: v7x
topology: tpu7x:2x2x1
jax: 0.10.0
libtpu: 0.0.40
codegen_flags: <defaults>
</compile_context>

<pallas_src>
import functools

import jax
import jax.numpy as jnp
from jax.experimental import pallas as pl
from jax.experimental.pallas import tpu as pltpu

_LANE = 128
_SUBLANE = 8


def _round_up(x, m):
    return (x + m - 1) // m * m


def _dice_partial_kernel(p_ref, t_ref, out_ref, inter_ref, psq_ref, tsq_ref,
                         *, smooth):
    j = pl.program_id(1)  # spatial (reduction) axis, innermost

    @pl.when(j == 0)
    def _():
        inter_ref[...] = jnp.zeros_like(inter_ref)
        psq_ref[...] = jnp.zeros_like(psq_ref)
        tsq_ref[...] = jnp.zeros_like(tsq_ref)

    p = p_ref[...].astype(jnp.float32)            # (tb, thw)
    t = t_ref[...].astype(jnp.float32)            # (tb, thw)

    inter_ref[...] += jnp.sum(p * t, axis=-1, keepdims=True)   # (tb, 1)
    psq_ref[...] += jnp.sum(p * p, axis=-1, keepdims=True)     # (tb, 1)
    tsq_ref[...] += jnp.sum(t * t, axis=-1, keepdims=True)     # (tb, 1)

    # Finalize this row block only after the full spatial reduction.
    @pl.when(j == pl.num_programs(1) - 1)
    def _():
        dice = 2.0 * inter_ref[...] / (psq_ref[...] + tsq_ref[...] + smooth)
        out_ref[...] = jnp.sum(dice, keepdims=True)            # (1, 1)


def dice_loss(pred, target, *, smooth=1.0):
    """pred, target: arrays of shape (N, C, H, W). Returns scalar loss."""
    assert pred.shape == target.shape and pred.ndim == 4
    N, C, H, W = pred.shape
    NC, HW = N * C, H * W

    # Stream in native dtype (no host-side f32 pre-cast).
    p2d = pred.reshape(NC, HW)
    t2d = target.reshape(NC, HW)
    itemsize = jnp.dtype(p2d.dtype).itemsize

    # ---- tile selection (mem-bound: big, VMEM-budgeted blocks) -------------
    # ~2 MiB per input block -> 2 inputs x 2 pipeline buffers ~ 8 MiB, inside
    # scoped-VMEM defaults on v5e (16 MiB), v6e (32 MiB), v7x (32 MiB).
    target_block_bytes = 2 * 1024 * 1024

    thw = min(_round_up(HW, _LANE), 16384)                 # lane-axis tile
    hw_pad = _round_up(HW, thw)
    n_hw_blocks = hw_pad // thw

    tb = max(_SUBLANE,
             (target_block_bytes // (thw * itemsize)) // _SUBLANE * _SUBLANE)
    n_row_blocks = pl.cdiv(NC, tb)
    tb = _round_up(pl.cdiv(NC, n_row_blocks), _SUBLANE)    # rebalance -> less pad
    nc_pad = n_row_blocks * tb

    if (nc_pad, hw_pad) != (NC, HW):
        p2d = jnp.pad(p2d, ((0, nc_pad - NC), (0, hw_pad - HW)))
        t2d = jnp.pad(t2d, ((0, nc_pad - NC), (0, hw_pad - HW)))

    kernel = functools.partial(_dice_partial_kernel, smooth=float(smooth))

    partials = pl.pallas_call(
        kernel,
        out_shape=jax.ShapeDtypeStruct((n_row_blocks, 1), jnp.float32),
        grid_spec=pltpu.PrefetchScalarGridSpec(
            num_scalar_prefetch=0,
            grid=(n_row_blocks, n_hw_blocks),
            in_specs=[
                pl.BlockSpec((tb, thw), lambda i, j: (i, j)),
                pl.BlockSpec((tb, thw), lambda i, j: (i, j)),
            ],
            out_specs=pl.BlockSpec((1, 1), lambda i, j: (i, 0)),
            scratch_shapes=[
                pltpu.VMEM((tb, 1), jnp.float32),   # sum(p*t)
                pltpu.VMEM((tb, 1), jnp.float32),   # sum(p*p)
                pltpu.VMEM((tb, 1), jnp.float32),   # sum(t*t)
            ],
        ),
        compiler_params=pltpu.CompilerParams(
            dimension_semantics=("parallel", "arbitrary"),
            vmem_limit_bytes=32 * 1024 * 1024,
        ),
        cost_estimate=pl.CostEstimate(
            flops=6 * nc_pad * hw_pad,
            transcendentals=0,
            bytes_accessed=2 * nc_pad * hw_pad * itemsize + 4 * n_row_blocks,
        ),
    )(p2d, t2d)

    # O(grid) scalars: final mean over the *real* N*C rows, then clamp.
    mean_dice = jnp.sum(partials) / jnp.float32(NC)
    return jnp.clip(1.0 - mean_dice, 0.0, 1.0)


def _dice_loss_ref(pred, target):
    """Pure-JAX reference mirroring the PyTorch loop."""
    smooth = 1.0
    C = pred.shape[1]
    dice = 0.0
    for i in range(C):
        num = 2.0 * jnp.sum(pred[:, i] * target[:, i], axis=(1, 2))
        den = (
            jnp.sum(pred[:, i] ** 2, axis=(1, 2))
            + jnp.sum(target[:, i] ** 2, axis=(1, 2))
            + smooth
        )
        dice = dice + num / den
    dice = dice / C
    return jnp.clip(jnp.mean(1.0 - dice), 0.0, 1.0)


if __name__ == "__main__":
    key = jax.random.PRNGKey(0)
    k1, k2, k3, k4 = jax.random.split(key, 4)

    # Case 1: nominal small NCHW shape.
    N, C, H, W = 2, 4, 16, 16
    pred = jax.nn.sigmoid(jax.random.normal(k1, (N, C, H, W), jnp.float32))
    target = (jax.random.uniform(k2, (N, C, H, W)) > 0.5).astype(jnp.float32)
    loss = jax.block_until_ready(dice_loss(pred, target))
    ref = jax.block_until_ready(_dice_loss_ref(pred, target))
    assert abs(float(loss) - float(ref)) < 1e-5, (float(loss), float(ref))

    # Case 2: exercises the zero-padding paths (NC % 8 != 0, HW % 128 != 0).
    N2, C2, H2, W2 = 1, 3, 10, 10
    pred2 = jax.nn.sigmoid(jax.random.normal(k3, (N2, C2, H2, W2), jnp.float32))
    target2 = (jax.random.uniform(k4, (N2, C2, H2, W2)) > 0.5).astype(jnp.float32)
    loss2 = jax.block_until_ready(dice_loss(pred2, target2))
    ref2 = jax.block_until_ready(_dice_loss_ref(pred2, target2))
    assert abs(float(loss2) - float(ref2)) < 1e-5, (float(loss2), float(ref2))

    print("KERNEL_OK")
</pallas_src>

<mosaic_0001>
module attributes {stable_mosaic.version = 11 : i64} {
  func.func @_dice_partial_kernel(%arg0: i32, %arg1: i32, %arg2: memref<8x256xf32, #tpu.memory_space<vmem>>, %arg3: memref<8x256xf32, #tpu.memory_space<vmem>>, %arg4: memref<1x1xf32, #tpu.memory_space<vmem>>, %arg5: memref<8x1xf32, #tpu.memory_space<vmem>>, %arg6: memref<8x1xf32, #tpu.memory_space<vmem>>, %arg7: memref<8x1xf32, #tpu.memory_space<vmem>>) attributes {dimension_semantics = [#tpu.dimension_semantics<parallel>, #tpu.dimension_semantics<arbitrary>], iteration_bounds = array<i64: 1, 1>, scalar_prefetch = 0 : i64, scratch_operands = 3 : i64, tpu.core_type = #tpu.core_type<tc>, window_params = [{transform_indices = @transform_0, window_bounds = array<i64: 8, 256>}, {transform_indices = @transform_1, window_bounds = array<i64: 8, 256>}, {transform_indices = @transform_2, window_bounds = array<i64: 1, 1>}]} {
    %c0_i32 = arith.constant 0 : i32
    %0 = arith.cmpi eq, %arg1, %c0_i32 : i32
    %1 = arith.extui %0 : i1 to i32
    %c0_i32_0 = arith.constant 0 : i32
    %2 = arith.cmpi ne, %1, %c0_i32_0 : i32
    scf.if %2 {
      %cst_20 = arith.constant 0.000000e+00 : f32
      %26 = vector.broadcast %cst_20 : f32 to vector<8x1xf32>
      %c0_21 = arith.constant 0 : index
      %c0_22 = arith.constant 0 : index
      %27 = vector.load %arg5[%c0_21, %c0_22] : memref<8x1xf32, #tpu.memory_space<vmem>>, vector<8x1xf32>
      tpu.vector_store %arg5[%c0_21, %c0_22], %26 {strides = array<i32>} : memref<8x1xf32, #tpu.memory_space<vmem>>, vector<8x1xf32>,
      %cst_23 = arith.constant 0.000000e+00 : f32
      %28 = vector.broadcast %cst_23 : f32 to vector<8x1xf32>
      %c0_24 = arith.constant 0 : index
      %c0_25 = arith.constant 0 : index
      %29 = vector.load %arg6[%c0_24, %c0_25] : memref<8x1xf32, #tpu.memory_space<vmem>>, vector<8x1xf32>
      tpu.vector_store %arg6[%c0_24, %c0_25], %28 {strides = array<i32>} : memref<8x1xf32, #tpu.memory_space<vmem>>, vector<8x1xf32>,
      %cst_26 = arith.constant 0.000000e+00 : f32
      %30 = vector.broadcast %cst_26 : f32 to vector<8x1xf32>
      %c0_27 = arith.constant 0 : index
      %c0_28 = arith.constant 0 : index
      %31 = vector.load %arg7[%c0_27, %c0_28] : memref<8x1xf32, #tpu.memory_space<vmem>>, vector<8x1xf32>
      tpu.vector_store %arg7[%c0_27, %c0_28], %30 {strides = array<i32>} : memref<8x1xf32, #tpu.memory_space<vmem>>, vector<8x1xf32>,
    } else {
    }
    %c0 = arith.constant 0 : index
    %c0_1 = arith.constant 0 : index
    %3 = vector.load %arg2[%c0, %c0_1] : memref<8x256xf32, #tpu.memory_space<vmem>>, vector<8x256xf32>
    %c0_2 = arith.constant 0 : index
    %c0_3 = arith.constant 0 : index
    %4 = vector.load %arg3[%c0_2, %c0_3] : memref<8x256xf32, #tpu.memory_space<vmem>>, vector<8x256xf32>
    %c0_4 = arith.constant 0 : index
    %c0_5 = arith.constant 0 : index
    %5 = vector.load %arg5[%c0_4, %c0_5] : memref<8x1xf32, #tpu.memory_space<vmem>>, vector<8x1xf32>
    %6 = arith.mulf %3, %4 : vector<8x256xf32>
    %cst = arith.constant dense<0.000000e+00> : vector<8xf32>
    %7 = vector.multi_reduction <add>, %6, %cst [1] : vector<8x256xf32> to vector<8xf32>
    %8 = vector.shape_cast %7 : vector<8xf32> to vector<8x1xf32>
    %9 = arith.addf %5, %8 : vector<8x1xf32>
    %c0_6 = arith.constant 0 : index
    %c0_7 = arith.constant 0 : index
    %10 = vector.load %arg5[%c0_6, %c0_7] : memref<8x1xf32, #tpu.memory_space<vmem>>, vector<8x1xf32>
    tpu.vector_store %arg5[%c0_6, %c0_7], %9 {strides = array<i32>} : memref<8x1xf32, #tpu.memory_space<vmem>>, vector<8x1xf32>,
    %c0_8 = arith.constant 0 : index
    %c0_9 = arith.constant 0 : index
    %11 = vector.load %arg6[%c0_8, %c0_9] : memref<8x1xf32, #tpu.memory_space<vmem>>, vector<8x1xf32>
    %12 = arith.mulf %3, %3 : vector<8x256xf32>
    %cst_10 = arith.constant dense<0.000000e+00> : vector<8xf32>
    %13 = vector.multi_reduction <add>, %12, %cst_10 [1] : vector<8x256xf32> to vector<8xf32>
    %14 = vector.shape_cast %13 : vector<8xf32> to vector<8x1xf32>
    %15 = arith.addf %11, %14 : vector<8x1xf32>
    %c0_11 = arith.constant 0 : index
    %c0_12 = arith.constant 0 : index
    %16 = vector.load %arg6[%c0_11, %c0_12] : memref<8x1xf32, #tpu.memory_space<vmem>>, vector<8x1xf32>
    tpu.vector_store %arg6[%c0_11, %c0_12], %15 {strides = array<i32>} : memref<8x1xf32, #tpu.memory_space<vmem>>, vector<8x1xf32>,
    %c0_13 = arith.constant 0 : index
    %c0_14 = arith.constant 0 : index
    %17 = vector.load %arg7[%c0_13, %c0_14] : memref<8x1xf32, #tpu.memory_space<vmem>>, vector<8x1xf32>
    %18 = arith.mulf %4, %4 : vector<8x256xf32>
    %cst_15 = arith.constant dense<0.000000e+00> : vector<8xf32>
    %19 = vector.multi_reduction <add>, %18, %cst_15 [1] : vector<8x256xf32> to vector<8xf32>
    %20 = vector.shape_cast %19 : vector<8xf32> to vector<8x1xf32>
    %21 = arith.addf %17, %20 : vector<8x1xf32>
    %c0_16 = arith.constant 0 : index
    %c0_17 = arith.constant 0 : index
    %22 = vector.load %arg7[%c0_16, %c0_17] : memref<8x1xf32, #tpu.memory_space<vmem>>, vector<8x1xf32>
    tpu.vector_store %arg7[%c0_16, %c0_17], %21 {strides = array<i32>} : memref<8x1xf32, #tpu.memory_space<vmem>>, vector<8x1xf32>,
    %c0_i32_18 = arith.constant 0 : i32
    %23 = arith.cmpi eq, %arg1, %c0_i32_18 : i32
    %24 = arith.extui %23 : i1 to i32
    %c0_i32_19 = arith.constant 0 : i32
    %25 = arith.cmpi ne, %24, %c0_i32_19 : i32
    scf.if %25 {
      %c0_20 = arith.constant 0 : index
      %c0_21 = arith.constant 0 : index
      %26 = vector.load %arg5[%c0_20, %c0_21] : memref<8x1xf32, #tpu.memory_space<vmem>>, vector<8x1xf32>
      %cst_22 = arith.constant 2.000000e+00 : f32
      %27 = vector.broadcast %cst_22 : f32 to vector<8x1xf32>
      %28 = arith.mulf %27, %26 : vector<8x1xf32>
      %c0_23 = arith.constant 0 : index
      %c0_24 = arith.constant 0 : index
      %29 = vector.load %arg6[%c0_23, %c0_24] : memref<8x1xf32, #tpu.memory_space<vmem>>, vector<8x1xf32>
      %c0_25 = arith.constant 0 : index
      %c0_26 = arith.constant 0 : index
      %30 = vector.load %arg7[%c0_25, %c0_26] : memref<8x1xf32, #tpu.memory_space<vmem>>, vector<8x1xf32>
      %31 = arith.addf %29, %30 : vector<8x1xf32>
      %cst_27 = arith.constant 1.000000e+00 : f32
      %32 = vector.broadcast %cst_27 : f32 to vector<8x1xf32>
      %33 = arith.addf %31, %32 : vector<8x1xf32>
      %34 = arith.divf %28, %33 : vector<8x1xf32>
      %35 = vector.shape_cast %34 : vector<8x1xf32> to vector<1x8x1xf32>
      %cst_28 = arith.constant dense<0.000000e+00> : vector<1xf32>
      %36 = vector.multi_reduction <add>, %35, %cst_28 [1, 2] : vector<1x8x1xf32> to vector<1xf32>
      %37 = vector.shape_cast %36 : vector<1xf32> to vector<1x1x1xf32>
      %38 = vector.extract %37[0, 0, 0] : f32 from vector<1x1x1xf32>
      %39 = vector.broadcast %38 : f32 to vector<1x1xf32>
      %c0_29 = arith.constant 0 : index
      %c0_30 = arith.constant 0 : index
      %40 = vector.load %arg4[%c0_29, %c0_30] : memref<1x1xf32, #tpu.memory_space<vmem>>, vector<1x1xf32>
      tpu.vector_store %arg4[%c0_29, %c0_30], %39 {strides = array<i32>} : memref<1x1xf32, #tpu.memory_space<vmem>>, vector<1x1xf32>,
    } else {
    }
    return
  }
  func.func @transform_0(%arg0: i32, %arg1: i32) -> (i32, i32) {
    %c0_i32 = arith.constant 0 : i32
    return %arg0, %arg1 : i32, i32
  }
  func.func @transform_1(%arg0: i32, %arg1: i32) -> (i32, i32) {
    %c0_i32 = arith.constant 0 : i32
    return %arg0, %arg1 : i32, i32
  }
  func.func @transform_2(%arg0: i32, %arg1: i32) -> (i32, i32) {
    %c0_i32 = arith.constant 0 : i32
    %c0_i32_0 = arith.constant 0 : i32
    return %arg0, %c0_i32 : i32, i32
  }
}

</mosaic_0001>

<bundles_post_ra>
// kernel: tpu_custom_call.1
= control target key start
LH: loop header
LB: loop body
LE: loop exit
PB: predicated region body
PF: predicated region fallthrough
CT: control target
= control target key end

     0   :  { %7 = vsyncpa [#allocation6], 0  ;;  %s255_s0 = inlined_call_operand.hbm [shape: f32[8,256], index: 0, kind: input, shape index: {}]   ;;  %s256_s1 = inlined_call_operand.hbm [shape: f32[8,256], index: 1, kind: input, shape index: {}]   ;;  %s257_s2 = inlined_call_operand.hbm [shape: f32[1,1], index: 2, kind: output, shape index: {}]  }
   0x1   :  { %8 = vsyncpa [#allocation9], 0 }
   0x2   :  { %9 = vsyncpa [#allocation7], 0  ;;  %s193_s9 = smov [#allocation5]   ;;  %s194_s11 = smov [#allocation8]  }
   0x3   :  { %s16_s10 = sshll.u32 %s193_s9, 4  ;;  %s26_s12 = sshll.u32 %s194_s11, 4  ;;  %s17_s10 = int_to_ptr.vmem [resolvable:$true] %s16_s10  ;;  %s27_s12 = int_to_ptr.vmem [resolvable:$true] %s26_s12 }
   0x4   :  { %s121_s15 = scalar_lea.hbm %s255_s0, 256 }
   0x5   :  { %p122_p0 = scmp.ne.s32.totalorder %s255_s0, %s121_s15  ;;  %p125_p1 = scmp.lt.u32.totalorder %s121_s15, %s255_s0 }
   0x7   :  { %p127_p2 = pnand %p125_p1, %p122_p0 }
   0x9   :  { %130 = shalt.err (!%p127_p2)
}
   0xa   :  { %s131_s20 = scalar_lea.vmem %s17_s10, 256  ;;  %p136_p4 = scmp.lt.s32.totalorder %s17_s10, %s17_s10 }
   0xb   :  { %p132_p3 = scmp.ne.s32.totalorder %s17_s10, %s131_s20  ;;  %p137_p5 = scmp.lt.s32.totalorder %s131_s20, %s131_s20 }
   0xd   :  { %p138_p6 = por %p137_p5, %p136_p4 }
   0xf   :  { %p139_p7 = pnand %p138_p6, %p132_p3 }
  0x11   :  { %142 = shalt.err (!%p139_p7)
}
  0x12   :  { %19 = dma.hbm_to_vmem [thread:$0]  %s255_s0, 256, %s17_s10, [#allocation6]  }
  0x13   :  { %s143_s25 = scalar_lea.hbm %s256_s1, 256 }
  0x14   :  { %p144_p8 = scmp.ne.s32.totalorder %s256_s1, %s143_s25  ;;  %p147_p9 = scmp.lt.u32.totalorder %s143_s25, %s256_s1 }
  0x16   :  { %p149_p10 = pnand %p147_p9, %p144_p8 }
  0x18   :  { %152 = shalt.err (!%p149_p10)
}
  0x19   :  { %s153_s30 = scalar_lea.vmem %s27_s12, 256  ;;  %p158_p12 = scmp.lt.s32.totalorder %s27_s12, %s27_s12 }
  0x1a   :  { %p154_p11 = scmp.ne.s32.totalorder %s27_s12, %s153_s30  ;;  %p159_p13 = scmp.lt.s32.totalorder %s153_s30, %s153_s30 }
  0x1c   :  { %p160_p0 = por %p159_p13, %p158_p12 }
  0x1e   :  { %p161_p1 = pnand %p160_p0, %p154_p11 }
  0x20   :  { %164 = shalt.err (!%p161_p1)
}
  0x21   :  { %29 = dma.hbm_to_vmem [thread:$0]  %s256_s1, 256, %s27_s12, [#allocation9]  }
  0x22   :  { %187 = dma.done.wait [#allocation6], 256  }
  0x23   :  { %188 = vsyncadd [#allocation6], 4294967040 }
  0x24   :  { %189 = dma.done.wait [#allocation9], 256  }
  0x25   :  { %190 = vsyncadd [#allocation9], 4294967040  ;;  %vm40_vm0 = vcmask 7168   ;;  %v195_v0 = vmov 0.0   ;;  %v44_v1 = vld [vmem:[#allocation5] sm:$0xff]  ;;  %v45_v2 = vld [vmem:[#allocation5 + $0x8] sm:$0xff] }
  0x26   :  { %42 = vst.msk [vmem:[#allocation3] sm:$0xff] %vm40_vm0, %v195_v0  ;;  %41 = vst.msk [vmem:[#allocation2] sm:$0xff] %vm40_vm0, %v195_v0  ;;  %v46_v3 = vld [vmem:[#allocation8] sm:$0xff]  ;;  %v58_v4 = vmul.f32 %v44_v1, %v44_v1  ;;  %v59_v5 = vmul.f32 %v45_v2, %v45_v2  ;;  %v47_v6 = vld [vmem:[#allocation8 + $0x8] sm:$0xff]  ;;  %s196_s1 = smov [#allocation10]   ;;  %vm95_vm1 = vcmask 0  }
  0x27   :  { %43 = vst.msk [vmem:[#allocation4] sm:$0xff] %vm40_vm0, %v195_v0  ;;  %v66_v7 = vmul.f32 %v46_v3, %v46_v3  ;;  %v49_v8 = vmul.f32 %v46_v3, %v44_v1  ;;  %v67_v9 = vmul.f32 %v47_v6, %v47_v6  ;;  %v50_v10 = vmul.f32 %v47_v6, %v45_v2  ;;  %s103_s4 = sshll.u32 %s196_s1, 4  ;;  %s104_s4 = int_to_ptr.vmem [resolvable:$true] %s103_s4 }
  0x28   :  { %v60_v11 = vadd.f32 %v59_v5, %v58_v4  ;;  %s165_s6 = scalar_lea.vmem %s104_s4, 16  ;;  %s169_s7 = scalar_lea.vmem %s104_s4, 32 }
  0x29   :  { %v51_v12 = vadd.f32 %v50_v10, %v49_v8  ;;  %v68_v13 = vadd.f32 %v67_v9, %v66_v7  ;;  %p166_p2 = scmp.ne.s32.totalorder %s104_s4, %s165_s6  ;;  %p170_p3 = scmp.lt.s32.totalorder %s104_s4, %s104_s4 }
  0x2a   :  { %61 = vadd.xlane.f32.xlu0 %v60_v11  ;;  %p171_p4 = scmp.lt.s32.totalorder %s169_s7, %s165_s6 }
  0x2b   :  { %52 = vadd.xlane.f32.xlu1 %v51_v12 }
  0x2c   :  { %p172_p5 = por %p171_p4, %p170_p3 }
  0x2d   :  { %v57_v14 = vld [vmem:[#allocation3] sm:$0xff]  ;;  %v48_v15 = vld [vmem:[#allocation2] sm:$0xff] }
  0x2e   :  { %69 = vadd.xlane.f32.xlu0 %v68_v13  ;;  %v65_v19 = vld [vmem:[#allocation4] sm:$0xff]  ;;  %p173_p6 = pnand %p172_p5, %p166_p2 }
  0xb7   :  { %v62_v16 = vpop.xlane.xlu0 %61 }
  0xb8   :  { %v63_v17 = vadd.f32 %v62_v16, %v57_v14  ;;  %v53_v18 = vpop.xlane.xlu1 %52 }
  0xb9   :  { %v54_v20 = vadd.f32 %v53_v18, %v48_v15 }
  0xba   :  { %64 = vst.msk [vmem:[#allocation3] sm:$0xff] %vm40_vm0, %v63_v17 }
  0xbb   :  { %v70_v21 = vpop.xlane.xlu0 %69  ;;  %56 = vst.msk [vmem:[#allocation2] sm:$0xff] %vm40_vm0, %v54_v20 }
  0xbc   :  { %v71_v22 = vadd.f32 %v70_v21, %v65_v19 }
  0xbe   :  { %72 = vst.msk [vmem:[#allocation4] sm:$0xff] %vm40_vm0, %v71_v22 }
  0xc1   :  { %v78_v23 = vld [vmem:[#allocation3] sm:$0xff] }
  0xc2   :  { %v76_v27 = vld [vmem:[#allocation2] sm:$0xff] }
  0xc3   :  { %v77_v28 = vmul.f32 2.0, %v76_v27 }
  0xc5   :  { %v79_v24 = vld [vmem:[#allocation4] sm:$0xff] }
  0xc6   :  { %v80_v25 = vadd.f32 %v79_v24, %v78_v23 }
  0xc8   :  { %v81_v26 = vadd.f32 1.0, %v80_v25 }
  0xca   :  { %119 = vrcp.f32 %v81_v26 }
  0xd4   :  { %v120_v29 = vpop.eup %119 }
  0xd5   :  { %v83_v30 = vmul.f32 %v120_v29, %v77_v28 }
  0xd7   :  { %v84_v31 = vsel %vm40_vm0, %v83_v30, 0.0 }
  0xd8   :  { %85 = vadd.xlane.f32.xlu1 %v84_v31 }
 0x165   :  { %v86_v32 = vpop.xlane.xlu1 %85 }
 0x166   :  { %v87_v33 = vrot.slane %v86_v32, 4 }
 0x168   :  { %v88_v34 = vadd.f32 %v87_v33, %v86_v32 }
 0x16a   :  { %v89_v35 = vrot.slane %v88_v34, 2 }
 0x16c   :  { %v90_v36 = vadd.f32 %v89_v35, %v88_v34 }
 0x16e   :  { %v91_v37 = vrot.slane %v90_v36, 1 }
 0x170   :  { %v92_v38 = vadd.f32 %v91_v37, %v90_v36 }
 0x172   :  { %113 = vpush %v92_v38 }
 0x1a3   :  { %s114_s5 = spop %113 }
 0x1a4   :  { %v94_v39 = vstv %s114_s5 }
 0x1a5   :  { %96 = vst.msk [vmem:[#allocation10] sm:$0x1] %vm95_vm1, %v94_v39 }
 0x1a6   :  { %176 = shalt.err (!%p173_p6)
}
 0x1a7   :  { %s177_s10 = scalar_lea.hbm %s257_s2, 16 }
 0x1a8   :  { %p178_p7 = scmp.ne.s32.totalorder %s257_s2, %s177_s10  ;;  %p181_p8 = scmp.lt.u32.totalorder %s177_s10, %s257_s2 }
 0x1aa   :  { %p183_p9 = pnand %p181_p8, %p178_p7 }
 0x1ac   :  { %186 = shalt.err (!%p183_p9)
}
 0x1ad   :  { %106 = dma.vmem_to_hbm [thread:$0]  %s104_s4, 16, %s257_s2, [#allocation7]  }
 0x1ae   :  { %191 = dma.done.wait [#allocation7], 16  }
 0x1af   :  { %192 = vsyncadd [#allocation7], 4294967280 }
 0x1b0   :  { %110 = vsyncpa [#allocation6], 1 }
 0x1b1   :  { %111 = vsyncpa [#allocation9], 1 }
 0x1b2   :  { %112 = vsyncpa [#allocation7], 1 }

</bundles_post_ra>
